<compile_context>
chip_gen: v7x
topology: tpu7x:2x2x1
jax: 0.10.0
libtpu: 0.0.40
codegen_flags: <defaults>
</compile_context>

<pallas_src>
import functools

import jax
import jax.numpy as jnp
from jax.experimental import pallas as pl
from jax.experimental.pallas import tpu as pltpu


def _epi_partials_kernel(ok_ref, err_ref, bg_ref, s1_ref, s2_ref, s3_ref, mx_ref):
    b = pl.program_id(0)   # batch sample (parallel)
    h = pl.program_id(1)   # H-tile (reduction, arbitrary)

    @pl.when(h == 0)
    def _init():
        s1_ref[...] = jnp.zeros_like(s1_ref)
        s2_ref[...] = jnp.zeros_like(s2_ref)
        s3_ref[...] = jnp.zeros_like(s3_ref)
        mx_ref[...] = jnp.full_like(mx_ref, -jnp.inf)

    @pl.when(ok_ref[b] != 0)
    def _accum():
        e = err_ref[...].astype(jnp.float32)    # (TH, W) tile, cast in-kernel
        bg = bg_ref[...].astype(jnp.float32)    # (TH, W) background-mask tile
        fg = 1.0 - bg
        s1_ref[...] += jnp.sum(bg * e)
        s2_ref[...] += jnp.sum(fg)
        s3_ref[...] += jnp.sum(fg * e)
        mx_ref[...] = jnp.maximum(mx_ref[...], jnp.max(e))


def _choose_tile_h(H, W, itemsize, budget_bytes=2 << 20):
    """Largest multiple-of-8 divisor of H whose (TH, W) tile fits the budget."""
    if H % 8 == 0:
        best = None
        for cand in range(8, H + 1, 8):
            if H % cand == 0 and cand * W * itemsize <= budget_bytes:
                best = cand
        return best if best is not None else 8
    return H  # block == full H is always layout-legal


def epipolar_loss(ok, err, masks, *, weight, neg_ratio=0.002, clip=10.0):
    """JAX/Pallas equivalent of EpipolarLoss.forward.

    ok:    [B]              bool
    err:   [B, H, W]        float (sampson error)
    masks: [B, L, K, H, W]  float (batch_out['masks'])

    Returns a scalar loss. Where PyTorch returns None (no valid sample) this
    returns 0.0 so the wrapper stays jit-traceable (no host sync).
    """
    del clip  # unused in the PyTorch forward as well
    B, H, W = err.shape
    _, L, K, mH, mW = masks.shape
    assert (mH, mW) == (H, W)

    itemsize = max(jnp.dtype(err.dtype).itemsize, jnp.dtype(masks.dtype).itemsize)
    th = _choose_tile_h(H, W, itemsize)
    n_h = H // th

    ok_i32 = ok.astype(jnp.int32)

    # (1, 8, 128) per-sample partial-sum blocks: layout-legal and tiny.
    part_shape = jax.ShapeDtypeStruct((B, 8, 128), jnp.float32)
    out_spec = pl.BlockSpec((1, 8, 128), lambda b, h, ok_s: (b, 0, 0))

    grid_spec = pltpu.PrefetchScalarGridSpec(
        num_scalar_prefetch=1,
        grid=(B, n_h),
        in_specs=[
            # err[b, h*th:(h+1)*th, :]
            pl.BlockSpec((pl.Squeezed(), th, W),
                         lambda b, h, ok_s: (b, h, 0)),
            # masks[b, L-1, 0, h*th:(h+1)*th, :]  -- bg layer picked by index_map
            pl.BlockSpec((pl.Squeezed(), pl.Squeezed(), pl.Squeezed(), th, W),
                         lambda b, h, ok_s: (b, L - 1, 0, h, 0)),
        ],
        out_specs=[out_spec, out_spec, out_spec, out_spec],
    )

    s1, s2, s3, mx = pl.pallas_call(
        _epi_partials_kernel,
        grid_spec=grid_spec,
        out_shape=[part_shape, part_shape, part_shape, part_shape],
        compiler_params=pltpu.CompilerParams(
            dimension_semantics=("parallel", "arbitrary"),
            vmem_limit_bytes=32 * 1024 * 1024,
        ),
    )(ok_i32, err, masks)

    okf = ok.astype(jnp.float32)
    num_ok = jnp.sum(okf)
    S1 = jnp.sum(s1[:, 0, 0])             # invalid samples contributed 0
    S2 = jnp.sum(s2[:, 0, 0])
    S3 = jnp.sum(s3[:, 0, 0])
    e_max = jnp.max(mx[:, 0, 0])          # invalid samples contributed -inf

    # Guard e_max <= 0 (all-zero err or no valid sample) against NaN/Inf.
    safe_e = jnp.where(e_max > 0.0, e_max, 1.0)
    total = S1 / safe_e + neg_ratio * (S2 - S3 / safe_e)
    count = jnp.maximum(num_ok * float(H * W), 1.0)
    loss = weight * total / count
    # PyTorch returns None when ok.sum() < 1; return 0.0 to stay traceable.
    return jnp.where(num_ok > 0.0, loss, 0.0)


def _reference(ok, err, masks, *, weight, neg_ratio):
    # plain-JAX reference mirroring the PyTorch forward
    errs = err[ok]
    m = masks[ok]
    e_max = errs.max()
    w = jnp.minimum(errs, e_max) / e_max      # clamp_max(err, e_max) / e_max
    bg = m[:, -1, 0]
    loss = bg * w + neg_ratio * (1.0 - bg) * (1.0 - w)
    return weight * loss.mean()


if __name__ == "__main__":
    key = jax.random.PRNGKey(0)
    k_err, k_mask = jax.random.split(key)

    B, L, K, H, W = 2, 3, 1, 16, 128
    weight = 1.5
    neg_ratio = 0.002

    err = jax.random.uniform(k_err, (B, H, W), dtype=jnp.float32) * 10.0
    masks = jax.random.uniform(k_mask, (B, L, K, H, W), dtype=jnp.float32)

    loss_fn = jax.jit(functools.partial(epipolar_loss, weight=weight,
                                        neg_ratio=neg_ratio))

    # case 1: all samples valid
    ok = jnp.array([True, True])
    out = jax.block_until_ready(loss_fn(ok, err, masks))
    ref = _reference(ok, err, masks, weight=weight, neg_ratio=neg_ratio)
    assert jnp.allclose(out, ref, rtol=1e-5, atol=1e-6), (out, ref)

    # case 2: one invalid sample (exercises the per-sample pl.when gate)
    ok2 = jnp.array([True, False])
    out2 = jax.block_until_ready(loss_fn(ok2, err, masks))
    ref2 = _reference(ok2, err, masks, weight=weight, neg_ratio=neg_ratio)
    assert jnp.allclose(out2, ref2, rtol=1e-5, atol=1e-6), (out2, ref2)

    # case 3: no valid sample -> 0.0 (PyTorch returns None), no NaN/Inf
    ok3 = jnp.array([False, False])
    out3 = jax.block_until_ready(loss_fn(ok3, err, masks))
    assert bool(jnp.isfinite(out3)) and float(out3) == 0.0, out3

    print("KERNEL_OK")
</pallas_src>

<mosaic_0001>
module attributes {stable_mosaic.version = 11 : i64} {
  func.func @_epi_partials_kernel(%arg0: i32, %arg1: i32, %arg2: memref<2xi32, #tpu.memory_space<smem>>, %arg3: memref<1x16x128xf32, #tpu.memory_space<vmem>>, %arg4: memref<1x1x1x16x128xf32, #tpu.memory_space<vmem>>, %arg5: memref<1x8x128xf32, #tpu.memory_space<vmem>>, %arg6: memref<1x8x128xf32, #tpu.memory_space<vmem>>, %arg7: memref<1x8x128xf32, #tpu.memory_space<vmem>>, %arg8: memref<1x8x128xf32, #tpu.memory_space<vmem>>) attributes {dimension_semantics = [#tpu.dimension_semantics<parallel>, #tpu.dimension_semantics<arbitrary>], iteration_bounds = array<i64: 2, 1>, scalar_prefetch = 1 : i64, scratch_operands = 0 : i64, tpu.core_type = #tpu.core_type<tc>, window_params = [{transform_indices = @transform_0, window_bounds = array<i64: 1, 16, 128>}, {transform_indices = @transform_1, window_bounds = array<i64: 1, 1, 1, 16, 128>}, {transform_indices = @transform_2, window_bounds = array<i64: 1, 8, 128>}, {transform_indices = @transform_3, window_bounds = array<i64: 1, 8, 128>}, {transform_indices = @transform_4, window_bounds = array<i64: 1, 8, 128>}, {transform_indices = @transform_5, window_bounds = array<i64: 1, 8, 128>}]} {
    %c0_i32 = arith.constant 0 : i32
    %0 = arith.cmpi eq, %arg1, %c0_i32 : i32
    %1 = arith.extui %0 : i1 to i32
    %c0_i32_0 = arith.constant 0 : i32
    %2 = arith.cmpi ne, %1, %c0_i32_0 : i32
    scf.if %2 {
      %cst = arith.constant 0.000000e+00 : f32
      %8 = vector.broadcast %cst : f32 to vector<1x8x128xf32>
      %c0 = arith.constant 0 : index
      %c0_3 = arith.constant 0 : index
      %c0_4 = arith.constant 0 : index
      %9 = vector.load %arg5[%c0, %c0_3, %c0_4] : memref<1x8x128xf32, #tpu.memory_space<vmem>>, vector<1x8x128xf32>
      tpu.vector_store %arg5[%c0, %c0_3, %c0_4], %8 {strides = array<i32>} : memref<1x8x128xf32, #tpu.memory_space<vmem>>, vector<1x8x128xf32>,
      %cst_5 = arith.constant 0.000000e+00 : f32
      %10 = vector.broadcast %cst_5 : f32 to vector<1x8x128xf32>
      %c0_6 = arith.constant 0 : index
      %c0_7 = arith.constant 0 : index
      %c0_8 = arith.constant 0 : index
      %11 = vector.load %arg6[%c0_6, %c0_7, %c0_8] : memref<1x8x128xf32, #tpu.memory_space<vmem>>, vector<1x8x128xf32>
      tpu.vector_store %arg6[%c0_6, %c0_7, %c0_8], %10 {strides = array<i32>} : memref<1x8x128xf32, #tpu.memory_space<vmem>>, vector<1x8x128xf32>,
      %cst_9 = arith.constant 0.000000e+00 : f32
      %12 = vector.broadcast %cst_9 : f32 to vector<1x8x128xf32>
      %c0_10 = arith.constant 0 : index
      %c0_11 = arith.constant 0 : index
      %c0_12 = arith.constant 0 : index
      %13 = vector.load %arg7[%c0_10, %c0_11, %c0_12] : memref<1x8x128xf32, #tpu.memory_space<vmem>>, vector<1x8x128xf32>
      tpu.vector_store %arg7[%c0_10, %c0_11, %c0_12], %12 {strides = array<i32>} : memref<1x8x128xf32, #tpu.memory_space<vmem>>, vector<1x8x128xf32>,
      %cst_13 = arith.constant 0xFF800000 : f32
      %14 = vector.broadcast %cst_13 : f32 to vector<1x8x128xf32>
      %c0_14 = arith.constant 0 : index
      %c0_15 = arith.constant 0 : index
      %c0_16 = arith.constant 0 : index
      %15 = vector.load %arg8[%c0_14, %c0_15, %c0_16] : memref<1x8x128xf32, #tpu.memory_space<vmem>>, vector<1x8x128xf32>
      tpu.vector_store %arg8[%c0_14, %c0_15, %c0_16], %14 {strides = array<i32>} : memref<1x8x128xf32, #tpu.memory_space<vmem>>, vector<1x8x128xf32>,
    } else {
    }
    %3 = arith.index_cast %arg0 : i32 to index
    %4 = memref.load %arg2[%3] : memref<2xi32, #tpu.memory_space<smem>>
    %c0_i32_1 = arith.constant 0 : i32
    %5 = arith.cmpi ne, %4, %c0_i32_1 : i32
    %6 = arith.extui %5 : i1 to i32
    %c0_i32_2 = arith.constant 0 : i32
    %7 = arith.cmpi ne, %6, %c0_i32_2 : i32
    scf.if %7 {
      %c0 = arith.constant 0 : index
      %c0_3 = arith.constant 0 : index
      %c0_4 = arith.constant 0 : index
      %8 = vector.load %arg3[%c0, %c0_3, %c0_4] : memref<1x16x128xf32, #tpu.memory_space<vmem>>, vector<1x16x128xf32>
      %9 = vector.shape_cast %8 : vector<1x16x128xf32> to vector<16x128xf32>
      %c0_5 = arith.constant 0 : index
      %c0_6 = arith.constant 0 : index
      %c0_7 = arith.constant 0 : index
      %c0_8 = arith.constant 0 : index
      %c0_9 = arith.constant 0 : index
      %10 = vector.load %arg4[%c0_5, %c0_6, %c0_7, %c0_8, %c0_9] : memref<1x1x1x16x128xf32, #tpu.memory_space<vmem>>, vector<1x1x1x16x128xf32>
      %11 = vector.shape_cast %10 : vector<1x1x1x16x128xf32> to vector<16x128xf32>
      %cst = arith.constant 1.000000e+00 : f32
      %12 = vector.broadcast %cst : f32 to vector<16x128xf32>
      %13 = arith.subf %12, %11 : vector<16x128xf32>
      %c0_10 = arith.constant 0 : index
      %c0_11 = arith.constant 0 : index
      %c0_12 = arith.constant 0 : index
      %14 = vector.load %arg5[%c0_10, %c0_11, %c0_12] : memref<1x8x128xf32, #tpu.memory_space<vmem>>, vector<1x8x128xf32>
      %15 = arith.mulf %11, %9 : vector<16x128xf32>
      %16 = vector.shape_cast %15 : vector<16x128xf32> to vector<1x16x128xf32>
      %cst_13 = arith.constant dense<0.000000e+00> : vector<1xf32>
      %17 = vector.multi_reduction <add>, %16, %cst_13 [1, 2] : vector<1x16x128xf32> to vector<1xf32>
      %18 = vector.shape_cast %17 : vector<1xf32> to vector<1x1x1xf32>
      %19 = vector.extract %18[0, 0, 0] : f32 from vector<1x1x1xf32>
      %20 = vector.broadcast %19 : f32 to vector<1x8x128xf32>
      %21 = arith.addf %14, %20 : vector<1x8x128xf32>
      %c0_14 = arith.constant 0 : index
      %c0_15 = arith.constant 0 : index
      %c0_16 = arith.constant 0 : index
      %22 = vector.load %arg5[%c0_14, %c0_15, %c0_16] : memref<1x8x128xf32, #tpu.memory_space<vmem>>, vector<1x8x128xf32>
      tpu.vector_store %arg5[%c0_14, %c0_15, %c0_16], %21 {strides = array<i32>} : memref<1x8x128xf32, #tpu.memory_space<vmem>>, vector<1x8x128xf32>,
      %c0_17 = arith.constant 0 : index
      %c0_18 = arith.constant 0 : index
      %c0_19 = arith.constant 0 : index
      %23 = vector.load %arg6[%c0_17, %c0_18, %c0_19] : memref<1x8x128xf32, #tpu.memory_space<vmem>>, vector<1x8x128xf32>
      %24 = vector.shape_cast %13 : vector<16x128xf32> to vector<1x16x128xf32>
      %cst_20 = arith.constant dense<0.000000e+00> : vector<1xf32>
      %25 = vector.multi_reduction <add>, %24, %cst_20 [1, 2] : vector<1x16x128xf32> to vector<1xf32>
      %26 = vector.shape_cast %25 : vector<1xf32> to vector<1x1x1xf32>
      %27 = vector.extract %26[0, 0, 0] : f32 from vector<1x1x1xf32>
      %28 = vector.broadcast %27 : f32 to vector<1x8x128xf32>
      %29 = arith.addf %23, %28 : vector<1x8x128xf32>
      %c0_21 = arith.constant 0 : index
      %c0_22 = arith.constant 0 : index
      %c0_23 = arith.constant 0 : index
      %30 = vector.load %arg6[%c0_21, %c0_22, %c0_23] : memref<1x8x128xf32, #tpu.memory_space<vmem>>, vector<1x8x128xf32>
      tpu.vector_store %arg6[%c0_21, %c0_22, %c0_23], %29 {strides = array<i32>} : memref<1x8x128xf32, #tpu.memory_space<vmem>>, vector<1x8x128xf32>,
      %c0_24 = arith.constant 0 : index
      %c0_25 = arith.constant 0 : index
      %c0_26 = arith.constant 0 : index
      %31 = vector.load %arg7[%c0_24, %c0_25, %c0_26] : memref<1x8x128xf32, #tpu.memory_space<vmem>>, vector<1x8x128xf32>
      %32 = arith.mulf %13, %9 : vector<16x128xf32>
      %33 = vector.shape_cast %32 : vector<16x128xf32> to vector<1x16x128xf32>
      %cst_27 = arith.constant dense<0.000000e+00> : vector<1xf32>
      %34 = vector.multi_reduction <add>, %33, %cst_27 [1, 2] : vector<1x16x128xf32> to vector<1xf32>
      %35 = vector.shape_cast %34 : vector<1xf32> to vector<1x1x1xf32>
      %36 = vector.extract %35[0, 0, 0] : f32 from vector<1x1x1xf32>
      %37 = vector.broadcast %36 : f32 to vector<1x8x128xf32>
      %38 = arith.addf %31, %37 : vector<1x8x128xf32>
      %c0_28 = arith.constant 0 : index
      %c0_29 = arith.constant 0 : index
      %c0_30 = arith.constant 0 : index
      %39 = vector.load %arg7[%c0_28, %c0_29, %c0_30] : memref<1x8x128xf32, #tpu.memory_space<vmem>>, vector<1x8x128xf32>
      tpu.vector_store %arg7[%c0_28, %c0_29, %c0_30], %38 {strides = array<i32>} : memref<1x8x128xf32, #tpu.memory_space<vmem>>, vector<1x8x128xf32>,
      %c0_31 = arith.constant 0 : index
      %c0_32 = arith.constant 0 : index
      %c0_33 = arith.constant 0 : index
      %40 = vector.load %arg8[%c0_31, %c0_32, %c0_33] : memref<1x8x128xf32, #tpu.memory_space<vmem>>, vector<1x8x128xf32>
      %41 = vector.shape_cast %9 : vector<16x128xf32> to vector<1x16x128xf32>
      %cst_34 = arith.constant dense<0xFF800000> : vector<1xf32>
      %42 = vector.multi_reduction <maximumf>, %41, %cst_34 [1, 2] : vector<1x16x128xf32> to vector<1xf32>
      %43 = vector.shape_cast %42 : vector<1xf32> to vector<1x1x1xf32>
      %44 = vector.extract %43[0, 0, 0] : f32 from vector<1x1x1xf32>
      %45 = vector.broadcast %44 : f32 to vector<1x8x128xf32>
      %46 = arith.maximumf %40, %45 : vector<1x8x128xf32>
      %c0_35 = arith.constant 0 : index
      %c0_36 = arith.constant 0 : index
      %c0_37 = arith.constant 0 : index
      %47 = vector.load %arg8[%c0_35, %c0_36, %c0_37] : memref<1x8x128xf32, #tpu.memory_space<vmem>>, vector<1x8x128xf32>
      tpu.vector_store %arg8[%c0_35, %c0_36, %c0_37], %46 {strides = array<i32>} : memref<1x8x128xf32, #tpu.memory_space<vmem>>, vector<1x8x128xf32>,
    } else {
    }
    return
  }
  func.func @transform_0(%arg0: i32, %arg1: i32, %arg2: memref<2xi32, #tpu.memory_space<smem>>) -> (i32, i32, i32) {
    %c0_i32 = arith.constant 0 : i32
    %c0_i32_0 = arith.constant 0 : i32
    return %arg0, %arg1, %c0_i32 : i32, i32, i32
  }
  func.func @transform_1(%arg0: i32, %arg1: i32, %arg2: memref<2xi32, #tpu.memory_space<smem>>) -> (i32, i32, i32, i32, i32) {
    %c2_i32 = arith.constant 2 : i32
    %c0_i32 = arith.constant 0 : i32
    %c0_i32_0 = arith.constant 0 : i32
    %c0_i32_1 = arith.constant 0 : i32
    return %arg0, %c2_i32, %c0_i32, %arg1, %c0_i32_0 : i32, i32, i32, i32, i32
  }
  func.func @transform_2(%arg0: i32, %arg1: i32, %arg2: memref<2xi32, #tpu.memory_space<smem>>) -> (i32, i32, i32) {
    %c0_i32 = arith.constant 0 : i32
    %c0_i32_0 = arith.constant 0 : i32
    %c0_i32_1 = arith.constant 0 : i32
    return %arg0, %c0_i32, %c0_i32_0 : i32, i32, i32
  }
  func.func @transform_3(%arg0: i32, %arg1: i32, %arg2: memref<2xi32, #tpu.memory_space<smem>>) -> (i32, i32, i32) {
    %c0_i32 = arith.constant 0 : i32
    %c0_i32_0 = arith.constant 0 : i32
    %c0_i32_1 = arith.constant 0 : i32
    return %arg0, %c0_i32, %c0_i32_0 : i32, i32, i32
  }
  func.func @transform_4(%arg0: i32, %arg1: i32, %arg2: memref<2xi32, #tpu.memory_space<smem>>) -> (i32, i32, i32) {
    %c0_i32 = arith.constant 0 : i32
    %c0_i32_0 = arith.constant 0 : i32
    %c0_i32_1 = arith.constant 0 : i32
    return %arg0, %c0_i32, %c0_i32_0 : i32, i32, i32
  }
  func.func @transform_5(%arg0: i32, %arg1: i32, %arg2: memref<2xi32, #tpu.memory_space<smem>>) -> (i32, i32, i32) {
    %c0_i32 = arith.constant 0 : i32
    %c0_i32_0 = arith.constant 0 : i32
    %c0_i32_1 = arith.constant 0 : i32
    return %arg0, %c0_i32, %c0_i32_0 : i32, i32, i32
  }
}

</mosaic_0001>

<bundles_post_ra>
// kernel: epipolar_loss.1
= control target key start
LH: loop header
LB: loop body
LE: loop exit
PB: predicated region body
PF: predicated region fallthrough
CT: control target
= control target key end

     0   :  { %s1098_s0 = inlined_call_operand.vmem [shape: s32[2], index: 0, kind: input, shape index: {}]   ;;  %s1099_s1 = inlined_call_operand.hbm [shape: f32[2,16,128], index: 1, kind: input, shape index: {}]   ;;  %s1100_s2 = inlined_call_operand.hbm [shape: f32[2,3,1,16,128], index: 2, kind: input, shape index: {}]   ;;  %s1101_s3 = inlined_call_operand.vmem [shape: f32[2,8,128], index: 3, kind: output, shape index: {0}]   ;;  %s1102_s4 = inlined_call_operand.vmem [shape: f32[2,8,128], index: 4, kind: output, shape index: {1}]   ;;  %s1103_s5 = inlined_call_operand.vmem [shape: f32[2,8,128], index: 5, kind: output, shape index: {2}]   ;;  %s1104_s6 = inlined_call_operand.vmem [shape: f32[2,8,128], index: 6, kind: output, shape index: {3}]  }
   0x1   :  { %s12_s23 = sshll.u32 %s1098_s0, 4  ;;  %s13_s23 = int_to_ptr.vmem [resolvable:$true] %s12_s23 }
   0x2   :  { %s712_s24 = scalar_lea.vmem %s13_s23, 16  ;;  %p717_p1 = scmp.lt.s32.totalorder %s13_s23, %s13_s23 }
   0x3   :  { %p713_p0 = scmp.ne.s32.totalorder %s13_s23, %s712_s24  ;;  %p718_p2 = scmp.lt.s32.totalorder %s712_s24, %s712_s24 }
   0x5   :  { %p719_p3 = por %p718_p2, %p717_p1 }
   0x7   :  { %p720_p4 = pnand %p719_p3, %p713_p0 }
   0x9   :  { %723 = shalt.err (!%p720_p4)  }
   0xa   :  { %s843_s25 = smov [#allocation3]  }
   0xb   :  { %15 = dma.vmem_to_smem %s13_s23, 16, %s843_s25, [#allocation2] }
   0xc   :  { %809 = dma.done.wait [#allocation2], 16 }
   0xd   :  { %810 = vsyncadd [#allocation2], 4294967280 }
   0xe   :  { %17 = sfence }
   0xf   :  { %18 = vsyncpa [#allocation5], 0 }
  0x10   :  { %20 = vsyncpa [#allocation5 + $0x1], 0 }
  0x11   :  { %21 = vsyncpa [#allocation7], 0 }
  0x12   :  { %23 = vsyncpa [#allocation7 + $0x1], 0  ;;  %s888_s26 = smov 0   ;;  %s890_s0 = smov 0  }
  0x13   :  { %s892_s27 = smov 0   ;;  %s894_s28 = smov 0  }
  0x14   :  { %s896_s29 = smov 0   ;;  %s898_s30 = smov 0  }
  0x15 LB: > { %s619_s7 = sadd.s32 4294967295, %s841_s30   ;;  %s41_s8 = sadd.s32 1, %s837_s29  ;;  %s841_s30 = sphi %s898_s30, %s29_s30   ;;  %s837_s29 = sphi %s896_s29, %s1115_s29   ;;  %s833_s28 = sphi %s894_s28, %s1114_s28   ;;  %s829_s27 = sphi %s892_s27, %s1113_s27   ;;  %s825_s0 = sphi %s890_s0, %s1112_s0   ;;  %s821_s26 = sphi %s888_s26, %s1111_s26  }
  0x16   : > { %p43_p5 = scmp.ge.s32.totalorder %s41_s8, 2  ;;  %s50_s9 = sadd.s32 1, %s829_s27 }
  0x17   : > { %p57_p6 = scmp.ne.s32.totalorder %s829_s27, %s825_s0  ;;  %p58_p7 = scmp.eq.s32.totalorder %s841_s30, 0 }
  0x18   : > { %s1117_s8 = smov (%p43_p5, %s41_s8), 0  ;;  %p63_p9 = scmp.ne.s32.totalorder %s825_s0, %s821_s26 }
  0x19   : > { %p924_p8 = por %p58_p7, %p57_p6  ;;  %s45_s11 = ssub.s32 %s837_s29, %s1117_s8 }
  0x1a   : > { %p64_p10 = scmp.eq.s32.totalorder %s619_s7, 0  ;;  %p48_p11 = scmp.eq.s32.totalorder %s45_s11, 0 }
  0x1b   : > { %p658_p13 = scmp.lt.s32.totalorder %s841_s30, 2  ;;  %s940_s14 = sand.u32 1, %s829_s27  }
  0x1c   : > { %p931_p12 = por %p64_p10, %p63_p9  ;;  %s638_s15 = sshll.u32 %s837_s29, 8 }
  0x1d   : > { %s937_s13 = scalar_select %p48_p11, %s829_s27, %s50_s9  }
  0x1e   : > { %s1107_s12 = scalar_select %p931_p12, 1, 0 }
  0x1f   : > { %s623_s16 = sshll.u32 %s940_s14, 4  ;;  %s947_s19 = scalar_lea.hbm %s1099_s1, %s638_s15 }
  0x20   : > { %s223_s20 = scalar_lea.vmem [#allocation4], %s623_s16  ;;  %p953_p0 = pnand %p658_p13, %p924_p8 }
  0x21   : > { %s232_s21 = sshll.u32 %s223_s20, 4  ;;  %s220_s23 = scalar_lea.sflag [#allocation5], %s940_s14  ;;  %s957_s21 = int_to_ptr.vmem [resolvable:$true] %s232_s21 }
  0x22   : > { %s724_s24 = scalar_lea.hbm %s947_s19, 256  ;;  %p726_p2 = pneg %p953_p0 }
  0x23   : > { %p725_p1 = scmp.ne.s32.totalorder %s947_s19, %s724_s24  ;;  %s729_s7 = scalar_lea.hbm %s1099_s1, 512 }
  0x24   : > { %p730_p5 = scmp.lt.u32.totalorder %s947_s19, %s1099_s1  ;;  %p731_p6 = scmp.lt.u32.totalorder %s729_s7, %s724_s24 }
  0x25   : > { %p727_p3 = pnand %p726_p2, %p725_p1  ;;  %p733_p8 = scmp.lt.u32.totalorder %s724_s24, %s947_s19 }
  0x26   : > { %p732_p7 = por %p731_p6, %p730_p5 }
  0x27   : > { %p728_p4 = pneg %p727_p3 }
  0x28   : > { %p734_p9 = por %p733_p8, %p732_p7 }
  0x2a   : > { %p735_p10 = pnand %p734_p9, %p728_p4 }
  0x2c   : > { %738 = shalt.err (!%p735_p10)
}
  0x2d   : > { %s739_s11 = scalar_lea.vmem %s957_s21, 256  ;;  %s844_s15 = smov [#allocation4]  }
  0x2e   : > { %p740_p11 = scmp.ne.s32.totalorder %s957_s21, %s739_s11  ;;  %s744_s17 = sshll.u32 %s844_s15, 4  ;;  %s745_s17 = int_to_ptr.vmem [resolvable:$false] %s744_s17 }
  0x2f   : > { %s746_s18 = scalar_lea.vmem %s745_s17, 512  ;;  %p747_p3 = scmp.lt.s32.totalorder %s957_s21, %s745_s17 }
  0x30   : > { %p742_p13 = pnand %p740_p11, %p726_p2  ;;  %p748_p5 = scmp.lt.s32.totalorder %s746_s18, %s739_s11 }
  0x32   : > { %p743_p1 = pneg %p742_p13  ;;  %p749_p6 = por %p748_p5, %p747_p3 }
  0x34   : > { %p750_p7 = pnand %p749_p6, %p743_p1 }
  0x36   : > { %753 = shalt.err (!%p750_p7)
}
  0x37   : > { %s845_s20 = smov 128   ;;  %s846_s24 = smov 8  }
  0x38   : > { %654 = dma.hbm_to_vmem [thread:$0]  (!%p953_p0), %s947_s19, 256, %s957_s21, %s220_s23, %s845_s20, %s845_s20, %s846_s24  }
  0x39   : > { %p628_p4 = scmp.ge.s32.totalorder %s841_s30, 1  ;;  %p264_p8 = scmp.lt.s32.totalorder %s841_s30, 3 }
  0x3a   : > { %s627_s26 = smul.u32 768, %s837_s29  ;;  %s246_s7 = scalar_lea.vmem [#allocation6], %s623_s16 }
  0x3b   : > { %p992_p9 = pnand %p628_p4, %p264_p8  ;;  %s256_s9 = sshll.u32 %s246_s7, 4  ;;  %s1002_s9 = int_to_ptr.vmem [resolvable:$true] %s256_s9 }
  0x3c   : > { %s505_s15 = scalar_lea.hbm %s1100_s2, %s627_s26  ;;  %s243_s19 = scalar_lea.sflag [#allocation7], %s940_s14 }
  0x3d   : > { %s1004_s17 = scalar_lea.hbm %s505_s15, 512  ;;  %s784_s21 = scalar_lea.hbm %s505_s15, 768 }
  0x3e   : > { %p755_p10 = scmp.ne.s32.totalorder %s1004_s17, %s784_s21  ;;  %s759_s18 = scalar_lea.hbm %s1100_s2, 1536 }
  0x3f   : > { %p760_p1 = scmp.lt.u32.totalorder %s1004_s17, %s1100_s2  ;;  %p761_p3 = scmp.lt.u32.totalorder %s759_s18, %s784_s21 }
  0x40   : > { %p757_p11 = pnand %p755_p10, %p726_p2  ;;  %p763_p6 = scmp.lt.u32.totalorder %s784_s21, %s1004_s17 }
  0x41   : > { %p762_p5 = por %p761_p3, %p760_p1 }
  0x42   : > { %p758_p13 = pneg %p757_p11 }
  0x43   : > { %p764_p7 = por %p763_p6, %p762_p5 }
  0x45   : > { %p765_p4 = pnand %p764_p7, %p758_p13 }
  0x47   : > { %768 = shalt.err (!%p765_p4)
}
  0x48   : > { %s769_s10 = scalar_lea.vmem %s1002_s9, 256  ;;  %s847_s11 = smov [#allocation6]  }
  0x49   : > { %p770_p8 = scmp.ne.s32.totalorder %s1002_s9, %s769_s10  ;;  %s774_s15 = sshll.u32 %s847_s11, 4  ;;  %s775_s15 = int_to_ptr.vmem [resolvable:$false] %s774_s15 }
  0x4a   : > { %s776_s16 = scalar_lea.vmem %s775_s15, 512  ;;  %p777_p12 = scmp.lt.s32.totalorder %s1002_s9, %s775_s15 }
  0x4b   : > { %p772_p10 = pnand %p770_p8, %p726_p2  ;;  %p778_p1 = scmp.lt.s32.totalorder %s776_s16, %s769_s10 }
  0x4d   : > { %p773_p11 = pneg %p772_p10  ;;  %p779_p3 = por %p778_p1, %p777_p12 }
  0x4f   : > { %p780_p5 = pnand %p779_p3, %p773_p11 }
  0x51   : > { %783 = shalt.err (!%p780_p5)
}
  0x52   : > { %657 = dma.hbm_to_vmem [thread:$0]  (!%p953_p0), %s1004_s17, 256, %s1002_s9, %s243_s19, %s845_s20, %s845_s20, %s846_s24  }
  0x53   : > { %268 = sbr.rel (%p992_p9) target bundleno = 320 (0x140), region = 28  ;;  %s270_s21 = sand.u32 (!%p992_p9), 1, %s825_s0  }
  0x54   : > { %s629_s23 = sshll.u32 (!%p992_p9), %s270_s21, 4  ;;  %s271_s18 = scalar_lea.sflag (!%p992_p9), [#allocation5], %s270_s21 }
  0x55   : > { %s274_s7 = scalar_lea.vmem (!%p992_p9), [#allocation4], %s629_s23  ;;  %p1110_p12 = scmp.ne.s32.totalorder (!%p992_p9), %s1107_s12, 0 }
  0x5a   : > { %812 = dma.done.wait (%p1110_p12), %s271_s18, 256  }
  0x5b   : > { %814 = vsyncadd (%p1110_p12), %s271_s18, 4294967040  ;;  %s280_s22 = scalar_lea.sflag [#allocation7], %s270_s21  ;;  %s283_s14 = scalar_lea.vmem [#allocation6], %s629_s23 }
  0x5c   : > { %816 = dma.done.wait (%p1110_p12), %s280_s22, 256  }
  0x5d   : > { %818 = vsyncadd (%p1110_p12), %s280_s22, 4294967040  ;;  %p328_p0 = scmp.lt.s32.totalorder %s833_s28, 1  ;;  %s352_s20 = sld [smem:[#allocation3 + %s833_s28]]  ;;  %v848_v0 = vmov 0.0   ;;  %v849_v1 = vmov -inf  }
  0x5f   : > { %s1119_s28 = smov (!%p328_p0, %s833_s28), 1 }
  0x60   : > { %s631_s24 = sshll.u32 %s1119_s28, 3 }
  0x61   : > { %s1051_s17 = scalar_lea.vmem %s1101_s3, %s631_s24  ;;  %s1056_s10 = scalar_lea.vmem %s1102_s4, %s631_s24 }
  0x62   : > { %348 = vst [vmem:[%s1051_s17] sm:$0xff] %v848_v0  ;;  %349 = vst [vmem:[%s1056_s10] sm:$0xff] %v848_v0  ;;  %s1063_s15 = scalar_lea.vmem %s1103_s5, %s631_s24  ;;  %s1068_s21 = scalar_lea.vmem %s1104_s6, %s631_s24 }
  0x63   : > { %350 = vst [vmem:[%s1063_s15] sm:$0xff] %v848_v0  ;;  %351 = vst [vmem:[%s1068_s21] sm:$0xff] %v849_v1  ;;  %p635_p2 = scmp.eq.s32.totalorder %s352_s20, 0 }
  0x64   : > { %v357_v2 = vld [vmem:[%s274_s7] sm:$0xff] (!%p635_p2)  ;;  %v358_v3 = vld [vmem:[%s274_s7 + $0x8] sm:$0xff] (!%p635_p2) }
  0x65   : > { %356 = sbr.rel (%p635_p2) target bundleno = 320 (0x140), region = 44  ;;  %v359_v4 = vld [vmem:[%s283_s14] sm:$0xff] (!%p635_p2)  ;;  %v360_v5 = vld [vmem:[%s283_s14 + $0x8] sm:$0xff] (!%p635_p2)  ;;  %v410_v15 = vmax.f32 (!%p635_p2), %v357_v2, %v358_v3 }
  0x66   : > { %v364_v6 = vmul.f32 (!%p635_p2), %v359_v4, %v357_v2  ;;  %v361_v7 = vsub.f32 (!%p635_p2), 1.0, %v359_v4  ;;  %v365_v8 = vmul.f32 (!%p635_p2), %v360_v5, %v358_v3  ;;  %v362_v9 = vsub.f32 (!%p635_p2), 1.0, %v360_v5 }
  0x68   : > { %v394_v10 = vmul.f32 (!%p635_p2), %v361_v7, %v357_v2  ;;  %v366_v11 = vadd.f32 (!%p635_p2), %v365_v8, %v364_v6  ;;  %v395_v12 = vmul.f32 (!%p635_p2), %v362_v9, %v358_v3  ;;  %v380_v14 = vadd.f32 (!%p635_p2), %v362_v9, %v361_v7 }
  0x69   : > { %v363_v44 = vld [vmem:[%s1051_s17] sm:$0xff] (!%p635_p2) }
  0x6a   : > { %367 = vadd.xlane.f32.xlu0 (!%p635_p2), %v366_v11  ;;  %v396_v13 = vadd.f32 (!%p635_p2), %v395_v12, %v394_v10  ;;  %v379_v47 = vld [vmem:[%s1056_s10] sm:$0xff] (!%p635_p2) }
  0x6b   : > { %v393_v48 = vld [vmem:[%s1063_s15] sm:$0xff] (!%p635_p2) }
  0x6c   : > { %397 = vadd.xlane.f32.xlu1 %v396_v13  ;;  %v409_v50 = vld [vmem:[%s1068_s21] sm:$0xff] }
  0x6e   : > { %381 = vadd.xlane.f32.xlu0 %v380_v14 }
  0x70   : > { %411 = vmax.xlane.f32.xlu1 %v410_v15 }
  0xf7   : > { %v368_v16 = vpop.xlane.xlu0 %367 }
  0xf8   : > { %v369_v17 = vrot.slane %v368_v16, 4 }
  0xf9   : > { %v398_v18 = vpop.xlane.xlu1 %397 }
  0xfa   : > { %v370_v19 = vadd.f32 %v369_v17, %v368_v16  ;;  %v399_v20 = vrot.slane %v398_v18, 4 }
  0xfb   : > { %v382_v21 = vpop.xlane.xlu0 %381 }
  0xfc   : > { %v371_v22 = vrot.slane %v370_v19, 2  ;;  %v400_v23 = vadd.f32 %v399_v20, %v398_v18  ;;  %v383_v24 = vrot.slane %v382_v21, 4 }
  0xfd   : > { %v412_v25 = vpop.xlane.xlu1 %411 }
  0xfe   : > { %v401_v26 = vrot.slane %v400_v23, 2  ;;  %v384_v27 = vadd.f32 %v383_v24, %v382_v21  ;;  %v413_v28 = vrot.slane %v412_v25, 4  ;;  %v372_v29 = vadd.f32 %v371_v22, %v370_v19 }
 0x100   : > { %v385_v30 = vrot.slane %v384_v27, 2  ;;  %v414_v31 = vmax.f32 %v412_v25, %v413_v28  ;;  %v373_v32 = vrot.slane %v372_v29, 1  ;;  %v402_v33 = vadd.f32 %v401_v26, %v400_v23 }
 0x102   : > { %v386_v34 = vadd.f32 %v385_v30, %v384_v27  ;;  %v415_v35 = vrot.slane %v414_v31, 2  ;;  %v374_v36 = vadd.f32 %v373_v32, %v372_v29  ;;  %v403_v37 = vrot.slane %v402_v33, 1 }
 0x104   : > { %v416_v38 = vmax.f32 %v414_v31, %v415_v35  ;;  %639 = vpush %v374_v36  ;;  %v387_v39 = vrot.slane %v386_v34, 1  ;;  %v404_v42 = vadd.f32 %v403_v37, %v402_v33 }
 0x106   : > { %v388_v40 = vadd.f32 %v387_v39, %v386_v34  ;;  %v417_v41 = vrot.slane %v416_v38, 1 }
 0x108   : > { %641 = vpush %v388_v40  ;;  %v418_v43 = vmax.f32 %v416_v38, %v417_v41 }
 0x109   : > { %643 = vpush %v404_v42 }
 0x10a   : > { %645 = vpush %v418_v43 }
 0x135   : > { %s640_s23 = spop %639 }
 0x136   : > { %v376_v45 = vstv %s640_s23 }
 0x137   : > { %v377_v46 = vadd.f32 %v376_v45, %v363_v44 }
 0x139   : > { %378 = vst [vmem:[%s1051_s17] sm:$0xff] %v377_v46  ;;  %s642_s18 = spop %641 }
 0x13a   : > { %v390_v49 = vstv %s642_s18  ;;  %s644_s7 = spop %643 }
 0x13b   : > { %v391_v51 = vadd.f32 %v390_v49, %v379_v47  ;;  %v406_v52 = vstv %s644_s7  ;;  %s646_s22 = spop %645 }
 0x13c   : > { %v407_v53 = vadd.f32 %v406_v52, %v393_v48  ;;  %v420_v54 = vstv %s646_s22 }
 0x13d   : > { %392 = vst [vmem:[%s1056_s10] sm:$0xff] %v391_v51  ;;  %v421_v55 = vmax.f32 %v409_v50, %v420_v54 }
 0x13e   : > { %408 = vst [vmem:[%s1063_s15] sm:$0xff] %v407_v53 }
 0x13f   : > { %422 = vst [vmem:[%s1068_s21] sm:$0xff] %v421_v55 }
 0x140 PF: > { %s29_s30 = sadd.s32 1, %s841_s30   ;;  %s1111_s26 = smov %s825_s0 }
 0x141   : > { %p26_p9 = scmp.ge.s32.totalorder %s29_s30, 4   ;;  %s1112_s0 = smov %s829_s27 }
 0x142   : > { %s1113_s27 = smov %s937_s13  ;;  %s1114_s28 = smov %s837_s29 }
 0x143   : > { %s1115_s29 = smov %s1117_s8  ;;  %28 = sbr.rel (!%p26_p9) target bundleno = 21 (0x15), region = 125 }
 0x14a   :  { %484 = vsyncpa [#allocation5], 1 }
 0x14b   :  { %486 = vsyncpa [#allocation5 + $0x1], 1 }
 0x14c   :  { %487 = vsyncpa [#allocation7], 1 }
 0x14d   :  { %489 = vsyncpa [#allocation7 + $0x1], 1 }

</bundles_post_ra>
